<compile_context>
chip_gen: v5e
topology: v5e:2x2
jax: 0.10.0
libtpu: 0.0.40
codegen_flags: <defaults>
</compile_context>

<pallas_src>
import functools
import math

import jax
import jax.numpy as jnp
from jax.experimental import pallas as pl
from jax.experimental.pallas import tpu as pltpu


# --------------------------------------------------------------------------- kernel

def _prenorm_kernel(x_ref, g_ref, b_ref, *rest, fn_body, eps):
    """One fused row block: y = fn(LayerNorm(x)).  rest = (*fn_param_refs, out_ref)."""
    *param_refs, o_ref = rest
    x = x_ref[...].astype(jnp.float32)
    mu = jnp.mean(x, axis=-1, keepdims=True)
    var = jnp.mean(jnp.square(x - mu), axis=-1, keepdims=True)
    normed = (x - mu) * jax.lax.rsqrt(var + eps)
    normed = normed * g_ref[...].astype(jnp.float32) + b_ref[...].astype(jnp.float32)
    out = fn_body(normed, *[p[...] for p in param_refs])
    o_ref[...] = out.astype(o_ref.dtype)


def prenorm(x, gamma, beta, *, fn_body=None, fn_params=(), out_dim=None,
            eps=1e-5, out_dtype=None, max_rows_per_block=512):
    """PreNorm.forward: fn(LayerNorm(x)), fused into one pallas_call.

    fn_body: JAX-traceable callable executed INSIDE the kernel on the
             normalized f32 tile; receives (normed [rows, dim], *fn_param_arrays)
             and returns [rows, out_dim].  Defaults to identity (pure LayerNorm).
             Static kwargs of the wrapped module should be closed over in
             fn_body (mirrors PyTorch's **kwargs pass-through).
    fn_params: weight/bias arrays of fn, handed to the kernel as whole blocks
               (index-map-resident across row blocks).
    """
    if fn_body is None:
        fn_body = lambda h: h
    D = x.shape[-1]
    out_dim = D if out_dim is None else out_dim
    out_dtype = x.dtype if out_dtype is None else jnp.dtype(out_dtype)
    lead = x.shape[:-1]
    M = math.prod(lead) if lead else 1
    x2 = x.reshape(M, D)  # dtype preserved: DMA in native width, upcast in-kernel

    # VMEM-sized row tiles: one block when M is small (no pipeline overhead on
    # single-TC v5e/v6e), otherwise fixed 8-aligned tiles + cdiv grid so v7x
    # shards blocks across both TCs.  Partial tail blocks are handled by
    # Pallas' masked writeback (rows are independent, so pad garbage is inert).
    if M <= max_rows_per_block:
        bm = M
    else:
        bm = max(8, max_rows_per_block - (max_rows_per_block % 8))
    n_blk = pl.cdiv(M, bm)

    in_specs = [
        pl.BlockSpec((bm, D), lambda i: (i, 0)),
        pl.BlockSpec((1, D), lambda i: (0, 0)),
        pl.BlockSpec((1, D), lambda i: (0, 0)),
    ]
    args = [x2, gamma.reshape(1, D), beta.reshape(1, D)]
    for p in fn_params:
        p2 = p.reshape(1, -1) if p.ndim == 1 else p
        in_specs.append(pl.BlockSpec(p2.shape, lambda i, _nd=p2.ndim: (0,) * _nd))
        args.append(p2)
    # TODO(synk): for production FFN sizes (D>=4k, H>=16k) the whole-block
    # weight specs above must become a hidden-dim "arbitrary" grid axis with a
    # VMEM f32 accumulator (pl.when init/finalize); whole-block weights only
    # target small demo shapes and would not fit v7x's 64 MiB VMEM.

    # Explicit VMEM budget: double-buffered x/out blocks + resident params +
    # headroom for fn_body intermediates, clamped to v7x's 64 MiB physical.
    work = 2 * bm * D * x2.dtype.itemsize
    work += 2 * bm * out_dim * out_dtype.itemsize
    work += 2 * sum(int(a.size) * a.dtype.itemsize for a in args[1:])
    work += 4 * bm * max(D, out_dim) * 4          # fn_body f32 scratch headroom
    vmem_limit = int(min(max(work + (4 << 20), 16 << 20), 64 << 20))

    out = pl.pallas_call(
        functools.partial(_prenorm_kernel, fn_body=fn_body, eps=eps),
        out_shape=jax.ShapeDtypeStruct((M, out_dim), out_dtype),
        grid=(n_blk,),
        in_specs=in_specs,
        out_specs=pl.BlockSpec((bm, out_dim), lambda i: (i, 0)),
        compiler_params=pltpu.CompilerParams(
            dimension_semantics=("parallel",),
            vmem_limit_bytes=vmem_limit,
        ),
    )(*args)
    return out.reshape(*lead, out_dim)


# ------------------------------------------------------------------- demo fn bodies

def feedforward_body(h, w1, b1, w2, b2):
    """FeedForward(dim, hidden): Linear -> ReLU -> Linear, fused after the norm.

    MXU inputs in bf16, accumulation + bias in f32; the ReLU output is cast to
    bf16 immediately (it feeds the second dot as bf16 anyway) to halve vreg
    pressure of the (rows, hidden) intermediate at large row tiles.
    """
    a = jnp.dot(h.astype(jnp.bfloat16), w1, preferred_element_type=jnp.float32) + b1
    a = jnp.maximum(a, 0.0).astype(jnp.bfloat16)
    return jnp.dot(a, w2, preferred_element_type=jnp.float32) + b2


# ------------------------------------------------------------------------ reference

def _layernorm_ref(x, gamma, beta, eps=1e-5):
    mu = jnp.mean(x, axis=-1, keepdims=True)
    var = jnp.mean(jnp.square(x - mu), axis=-1, keepdims=True)
    return (x - mu) * jax.lax.rsqrt(var + eps) * gamma + beta


# ----------------------------------------------------------------------------- main

if __name__ == "__main__":
    D, H = 128, 256   # small, lane-aligned shapes

    key = jax.random.PRNGKey(0)
    kx, kg, kb, k1, k2, k3, k4, kx2 = jax.random.split(key, 8)

    gamma = 1.0 + 0.1 * jax.random.normal(kg, (D,), jnp.float32)
    beta = 0.1 * jax.random.normal(kb, (D,), jnp.float32)

    # 1) PreNorm with identity fn == plain LayerNorm.  M = 128 rows -> a single
    #    block / grid=(1,) (no per-step overhead on single-TC chips).
    x = jax.random.normal(kx, (2, 64, D), jnp.float32)
    ln_fwd = jax.jit(lambda x, g, b: prenorm(x, g, b))
    out_ln = jax.block_until_ready(ln_fwd(x, gamma, beta))
    ref_ln = _layernorm_ref(x, gamma, beta)
    assert out_ln.shape == (2, 64, D), out_ln.shape
    assert jnp.allclose(out_ln, ref_ln, atol=1e-4, rtol=1e-4)

    # 2) PreNorm(dim, FeedForward(dim, hidden)) — LN + fn fused in ONE kernel.
    #    M = 1024 rows -> two 512-row tiles exercising the cdiv grid path.
    w1 = (0.05 * jax.random.normal(k1, (D, H), jnp.float32)).astype(jnp.bfloat16)
    b1 = 0.02 * jax.random.normal(k2, (H,), jnp.float32)
    w2 = (0.05 * jax.random.normal(k3, (H, D), jnp.float32)).astype(jnp.bfloat16)
    b2 = 0.02 * jax.random.normal(k4, (D,), jnp.float32)

    x_big = jax.random.normal(kx2, (2, 512, D), jnp.float32)
    ff_fwd = jax.jit(lambda x, g, b, w1, b1, w2, b2: prenorm(
        x, g, b, fn_body=feedforward_body, fn_params=(w1, b1, w2, b2), out_dim=D))
    out_ff = jax.block_until_ready(ff_fwd(x_big, gamma, beta, w1, b1, w2, b2))
    ref_ff = feedforward_body(
        _layernorm_ref(x_big, gamma, beta).reshape(-1, D), w1, b1, w2, b2
    ).reshape(2, 512, D)
    assert out_ff.shape == (2, 512, D), out_ff.shape
    assert jnp.allclose(out_ff, ref_ff, atol=3e-2, rtol=3e-2)

    print("KERNEL_OK")
</pallas_src>

<mosaic_0001>
module attributes {stable_mosaic.version = 11 : i64} {
  func.func @_prenorm_kernel(%arg0: i32, %arg1: memref<128x128xf32, #tpu.memory_space<vmem>>, %arg2: memref<1x128xf32, #tpu.memory_space<vmem>>, %arg3: memref<1x128xf32, #tpu.memory_space<vmem>>, %arg4: memref<128x128xf32, #tpu.memory_space<vmem>>) attributes {dimension_semantics = [#tpu.dimension_semantics<parallel>], iteration_bounds = array<i64: 1>, scalar_prefetch = 0 : i64, scratch_operands = 0 : i64, tpu.core_type = #tpu.core_type<tc>, window_params = [{transform_indices = @transform_0, window_bounds = array<i64: 128, 128>}, {pipeline_mode = #tpu.pipeline_mode<synchronous>, transform_indices = @transform_1, window_bounds = array<i64: 1, 128>}, {pipeline_mode = #tpu.pipeline_mode<synchronous>, transform_indices = @transform_2, window_bounds = array<i64: 1, 128>}, {transform_indices = @transform_3, window_bounds = array<i64: 128, 128>}]} {
    %c0 = arith.constant 0 : index
    %c0_0 = arith.constant 0 : index
    %0 = vector.load %arg1[%c0, %c0_0] : memref<128x128xf32, #tpu.memory_space<vmem>>, vector<128x128xf32>
    %cst = arith.constant dense<0.000000e+00> : vector<128xf32>
    %1 = vector.multi_reduction <add>, %0, %cst [1] : vector<128x128xf32> to vector<128xf32>
    %2 = vector.shape_cast %1 : vector<128xf32> to vector<128x1xf32>
    %cst_1 = arith.constant 1.280000e+02 : f32
    %3 = vector.broadcast %cst_1 : f32 to vector<128x1xf32>
    %4 = arith.divf %2, %3 : vector<128x1xf32>
    %5 = vector.broadcast %4 : vector<128x1xf32> to vector<128x128xf32>
    %6 = arith.subf %0, %5 : vector<128x128xf32>
    %7 = arith.mulf %6, %6 : vector<128x128xf32>
    %cst_2 = arith.constant dense<0.000000e+00> : vector<128xf32>
    %8 = vector.multi_reduction <add>, %7, %cst_2 [1] : vector<128x128xf32> to vector<128xf32>
    %9 = vector.shape_cast %8 : vector<128xf32> to vector<128x1xf32>
    %cst_3 = arith.constant 1.280000e+02 : f32
    %10 = vector.broadcast %cst_3 : f32 to vector<128x1xf32>
    %11 = arith.divf %9, %10 : vector<128x1xf32>
    %12 = vector.broadcast %4 : vector<128x1xf32> to vector<128x128xf32>
    %13 = arith.subf %0, %12 : vector<128x128xf32>
    %cst_4 = arith.constant 9.99999974E-6 : f32
    %14 = vector.broadcast %cst_4 : f32 to vector<128x1xf32>
    %15 = arith.addf %11, %14 : vector<128x1xf32>
    %16 = math.rsqrt %15 : vector<128x1xf32>
    %17 = vector.broadcast %16 : vector<128x1xf32> to vector<128x128xf32>
    %18 = arith.mulf %13, %17 : vector<128x128xf32>
    %c0_5 = arith.constant 0 : index
    %c0_6 = arith.constant 0 : index
    %19 = vector.load %arg2[%c0_5, %c0_6] : memref<1x128xf32, #tpu.memory_space<vmem>>, vector<1x128xf32>
    %20 = vector.broadcast %19 : vector<1x128xf32> to vector<128x128xf32>
    %21 = arith.mulf %18, %20 : vector<128x128xf32>
    %c0_7 = arith.constant 0 : index
    %c0_8 = arith.constant 0 : index
    %22 = vector.load %arg3[%c0_7, %c0_8] : memref<1x128xf32, #tpu.memory_space<vmem>>, vector<1x128xf32>
    %23 = vector.broadcast %22 : vector<1x128xf32> to vector<128x128xf32>
    %24 = arith.addf %21, %23 : vector<128x128xf32>
    %c0_9 = arith.constant 0 : index
    %c0_10 = arith.constant 0 : index
    %25 = vector.load %arg4[%c0_9, %c0_10] : memref<128x128xf32, #tpu.memory_space<vmem>>, vector<128x128xf32>
    tpu.vector_store %arg4[%c0_9, %c0_10], %24 {strides = array<i32>} : memref<128x128xf32, #tpu.memory_space<vmem>>, vector<128x128xf32>,
    return
  }
  func.func @transform_0(%arg0: i32) -> (i32, i32) {
    %c0_i32 = arith.constant 0 : i32
    %c0_i32_0 = arith.constant 0 : i32
    return %arg0, %c0_i32 : i32, i32
  }
  func.func @transform_1(%arg0: i32) -> (i32, i32) {
    %c0_i32 = arith.constant 0 : i32
    %c0_i32_0 = arith.constant 0 : i32
    %c0_i32_1 = arith.constant 0 : i32
    return %c0_i32, %c0_i32_0 : i32, i32
  }
  func.func @transform_2(%arg0: i32) -> (i32, i32) {
    %c0_i32 = arith.constant 0 : i32
    %c0_i32_0 = arith.constant 0 : i32
    %c0_i32_1 = arith.constant 0 : i32
    return %c0_i32, %c0_i32_0 : i32, i32
  }
  func.func @transform_3(%arg0: i32) -> (i32, i32) {
    %c0_i32 = arith.constant 0 : i32
    %c0_i32_0 = arith.constant 0 : i32
    return %arg0, %c0_i32 : i32, i32
  }
}

</mosaic_0001>

<bundles_post_ra>
// kernel: _lambda_.1
= control target key start
LH: loop header
LB: loop body
LE: loop exit
PB: predicated region body
PF: predicated region fallthrough
CT: control target
= control target key end

     0   :  { %8 = vsyncpa [#allocation3], 0  ;;  %s911_s0 = inlined_call_operand.hbm [shape: f32[128,128], index: 0, kind: input, shape index: {}]   ;;  %s912_s1 = inlined_call_operand.vmem [shape: f32[1,128], index: 1, kind: input, shape index: {}]   ;;  %s913_s2 = inlined_call_operand.vmem [shape: f32[1,128], index: 2, kind: input, shape index: {}]   ;;  %s914_s3 = inlined_call_operand.hbm [shape: f32[128,128], index: 3, kind: output, shape index: {}]  }
   0x1   :  { %9 = vsyncpa [#allocation4], 0  ;;  %s14_s14 = sshll.u32 %s911_s0, 4  ;;  %s542_s15 = smov [#allocation2]   ;;  %s15_s14 = int_to_ptr.hbm [resolvable:$true] %s14_s14 }
   0x2   :  { %s16_s16 = sshll.u32 %s542_s15, 4  ;;  %s543_s17 = smov 128   ;;  %s17_s16 = int_to_ptr.vmem [resolvable:$true] %s16_s16 }
   0x3   :  { %s544_s18 = smov 8  }
   0x4   :  { %22 = dma.hbm_to_vmem [thread:$0]  %s15_s14, 2048, %s17_s16, [#allocation3], %s543_s17, %s543_s17, %s544_s18  }
   0x5   :  { %538 = dma.done.wait [#allocation3], 2048  }
   0x6   :  { %539 = vsyncadd [#allocation3], 4294965248  ;;  %v573_v0 = vld [vmem:[#allocation2 + $0x20] sm:$0xff]  ;;  %v33_v1 = vld [vmem:[#allocation2 + $0x10] sm:$0xff]  ;;  %v545_v16 = vmov 128.0   ;;  %s436_s24 = sshll.u32 %s914_s3, 4  ;;  %s437_s24 = int_to_ptr.hbm [resolvable:$true] %s436_s24 }
   0x7   :  { %v31_v2 = vld [vmem:[#allocation2] sm:$0xff]  ;;  %55 = vadd.xlane.f32.xlu2 %v573_v0  ;;  %51 = vadd.xlane.f32.xlu1 %v33_v1  ;;  %v36_v3 = vld [vmem:[#allocation2 + $0x28] sm:$0xff]  ;;  %v34_v4 = vld [vmem:[#allocation2 + $0x18] sm:$0xff]  ;;  %456 = vrcp.f32 %v545_v16 }
   0x8   :  { %47 = vadd.xlane.f32.xlu0 %v31_v2  ;;  %v32_v5 = vld [vmem:[#allocation2 + $0x8] sm:$0xff]  ;;  %v39_v6 = vld [vmem:[#allocation2 + $0x40] sm:$0xff]  ;;  %v576_v7 = vld [vmem:[#allocation2 + $0x38] sm:$0xff] }
   0x9   :  { %v37_v8 = vld [vmem:[#allocation2 + $0x30] sm:$0xff]  ;;  %v579_v9 = vld [vmem:[#allocation2 + $0x58] sm:$0xff]  ;;  %v583_v11 = vld [vmem:[#allocation2 + $0x48] sm:$0xff] }
   0xa   :  { %v581_v10 = vld [vmem:[#allocation2 + $0x50] sm:$0xff]  ;;  %v590_v13 = vld [vmem:[#allocation2 + $0x68] sm:$0xff]  ;;  %v592_v14 = vld [vmem:[#allocation2 + $0x60] sm:$0xff] }
   0xb   :  { %v588_v12 = vld [vmem:[#allocation2 + $0x70] sm:$0xff]  ;;  %v597_v15 = vld [vmem:[#allocation2 + $0x78] sm:$0xff] }
   0xd   :  { %v457_v17 = vpop.eup %456 }
   0xe   :  { %v80_v18 = vmul.f32 128.0, %v457_v17  ;;  %vm84_vm0 = vweird.f32 %v457_v17 }
   0xf   :  { %57 = vadd.xlane.f32.xlu2 %v36_v3  ;;  %53 = vadd.xlane.f32.xlu1 %v34_v4 }
  0x10   :  { %49 = vadd.xlane.f32.xlu0 %v32_v5  ;;  %v81_v19 = vsub.f32 1.0, %v80_v18 }
  0x12   :  { %v82_v20 = vmul.f32 %v457_v17, %v81_v19 }
  0x14   :  { %v83_v21 = vadd.f32 %v457_v17, %v82_v20 }
  0x16   :  { %v600_v22 = vsel %vm84_vm0, %v457_v17, %v83_v21 }
  0x17   :  { %63 = vadd.xlane.f32.xlu2 %v39_v6  ;;  %61 = vadd.xlane.f32.xlu1 %v576_v7 }
  0x18   :  { %59 = vadd.xlane.f32.xlu0 %v37_v8 }
  0x1f   :  { %69 = vadd.xlane.f32.xlu2 %v579_v9  ;;  %67 = vadd.xlane.f32.xlu1 %v581_v10 }
  0x20   :  { %65 = vadd.xlane.f32.xlu0 %v583_v11 }
  0x27   :  { %75 = vadd.xlane.f32.xlu2 %v588_v12  ;;  %73 = vadd.xlane.f32.xlu1 %v590_v13 }
  0x28   :  { %71 = vadd.xlane.f32.xlu0 %v592_v14 }
  0x30   :  { %77 = vadd.xlane.f32.xlu0 %v597_v15 }
  0x7a   :  { %v56_v23 = vpop.xlane.xlu2 %55  ;;  %v52_v24 = vpop.xlane.xlu1 %51 }
  0x7b   :  { %v88_v25 = vmul.f32 %v600_v22, %v52_v24  ;;  %v48_v26 = vpop.xlane.xlu0 %47  ;;  %v90_v43 = vmul.f32 %v600_v22, %v56_v23 }
  0x7c   :  { %v86_v27 = vmul.f32 %v600_v22, %v48_v26 }
  0x7d   :  { %v604_v28 = vsub.f32 %v33_v1, %v88_v25  ;;  %v630_v49 = vsub.f32 %v573_v0, %v90_v43 }
  0x7e   :  { %v606_v29 = vsub.f32 %v31_v2, %v86_v27 }
  0x7f   :  { %v120_v30 = vmul.f32 %v604_v28, %v604_v28  ;;  %v122_v55 = vmul.f32 %v630_v49, %v630_v49 }
  0x80   :  { %v118_v31 = vmul.f32 %v606_v29, %v606_v29 }
  0x81   :  { %138 = vadd.xlane.f32.xlu0 %v120_v30 }
  0x82   :  { %134 = vadd.xlane.f32.xlu1 %v118_v31  ;;  %v58_v32 = vpop.xlane.xlu2 %57  ;;  %v54_v33 = vpop.xlane.xlu1 %53 }
  0x83   :  { %v91_v34 = vmul.f32 %v600_v22, %v58_v32  ;;  %v89_v35 = vmul.f32 %v600_v22, %v54_v33  ;;  %v50_v36 = vpop.xlane.xlu0 %49 }
  0x84   :  { %v87_v37 = vmul.f32 %v600_v22, %v50_v36 }
  0x85   :  { %v615_v38 = vsub.f32 %v36_v3, %v91_v34  ;;  %v617_v39 = vsub.f32 %v34_v4, %v89_v35 }
  0x86   :  { %v619_v40 = vsub.f32 %v32_v5, %v87_v37 }
  0x87   :  { %v123_v41 = vmul.f32 %v615_v38, %v615_v38  ;;  %v121_v42 = vmul.f32 %v617_v39, %v617_v39 }
  0x88   :  { %v119_v44 = vmul.f32 %v619_v40, %v619_v40 }
  0x89   :  { %144 = vadd.xlane.f32.xlu0 %v123_v41 }
  0x8a   :  { %140 = vadd.xlane.f32.xlu1 %v121_v42  ;;  %136 = vadd.xlane.f32.xlu2 %v119_v44  ;;  %v64_v45 = vpop.xlane.xlu2 %63  ;;  %v62_v46 = vpop.xlane.xlu1 %61 }
  0x8b   :  { %v94_v47 = vmul.f32 %v600_v22, %v64_v45  ;;  %v60_v48 = vpop.xlane.xlu0 %59  ;;  %v93_v53 = vmul.f32 %v600_v22, %v62_v46 }
  0x8c   :  { %v92_v50 = vmul.f32 %v600_v22, %v60_v48 }
  0x8d   :  { %v633_v51 = vsub.f32 %v39_v6, %v94_v47  ;;  %v645_v58 = vsub.f32 %v576_v7, %v93_v53 }
  0x8e   :  { %v635_v52 = vsub.f32 %v37_v8, %v92_v50 }
  0x8f   :  { %v126_v54 = vmul.f32 %v633_v51, %v633_v51  ;;  %v125_v1 = vmul.f32 %v645_v58, %v645_v58 }
  0x90   :  { %v124_v56 = vmul.f32 %v635_v52, %v635_v52 }
  0x91   :  { %150 = vadd.xlane.f32.xlu0 %v126_v54 }
  0x92   :  { %142 = vadd.xlane.f32.xlu2 %v122_v55  ;;  %146 = vadd.xlane.f32.xlu1 %v124_v56  ;;  %v70_v57 = vpop.xlane.xlu2 %69  ;;  %v68_v59 = vpop.xlane.xlu1 %67 }
  0x93   :  { %v97_v60 = vmul.f32 %v600_v22, %v70_v57  ;;  %v66_v61 = vpop.xlane.xlu0 %65  ;;  %v96_v2 = vmul.f32 %v600_v22, %v68_v59 }
  0x94   :  { %v95_v62 = vmul.f32 %v600_v22, %v66_v61 }
  0x95   :  { %v650_v63 = vsub.f32 %v579_v9, %v97_v60  ;;  %v663_v6 = vsub.f32 %v581_v10, %v96_v2 }
  0x96   :  { %v653_v0 = vsub.f32 %v583_v11, %v95_v62 }
  0x97   :  { %v129_v3 = vmul.f32 %v650_v63, %v650_v63  ;;  %v128_v18 = vmul.f32 %v663_v6, %v663_v6 }
  0x98   :  { %v127_v4 = vmul.f32 %v653_v0, %v653_v0 }
  0x99   :  { %156 = vadd.xlane.f32.xlu0 %v129_v3 }
  0x9a   :  { %148 = vadd.xlane.f32.xlu2 %v125_v1  ;;  %152 = vadd.xlane.f32.xlu1 %v127_v4  ;;  %v76_v5 = vpop.xlane.xlu2 %75  ;;  %v74_v9 = vpop.xlane.xlu1 %73 }
  0x9b   :  { %v100_v7 = vmul.f32 %v600_v22, %v76_v5  ;;  %v72_v8 = vpop.xlane.xlu0 %71  ;;  %v99_v19 = vmul.f32 %v600_v22, %v74_v9  ;;  %v721_v9 = vld [vmem:[%s912_s1] ss:$0 sm:$0xff] }
  0x9c   :  { %v98_v11 = vmul.f32 %v600_v22, %v72_v8 }
  0x9d   :  { %v668_v16 = vsub.f32 %v588_v12, %v100_v7  ;;  %v681_v12 = vsub.f32 %v590_v13, %v99_v19 }
  0x9e   :  { %v671_v17 = vsub.f32 %v592_v14, %v98_v11 }
  0x9f   :  { %v132_v10 = vmul.f32 %v668_v16, %v668_v16  ;;  %v131_v24 = vmul.f32 %v681_v12, %v681_v12 }
  0xa0   :  { %v130_v20 = vmul.f32 %v671_v17, %v671_v17 }
  0xa1   :  { %162 = vadd.xlane.f32.xlu0 %v132_v10 }
  0xa2   :  { %154 = vadd.xlane.f32.xlu2 %v128_v18  ;;  %158 = vadd.xlane.f32.xlu1 %v130_v20 }
  0xa3   :  { %v78_v21 = vpop.xlane.xlu0 %77 }
  0xa4   :  { %v101_v14 = vmul.f32 %v600_v22, %v78_v21 }
  0xa6   :  { %v685_v23 = vsub.f32 %v597_v15, %v101_v14 }
  0xa8   :  { %v133_v25 = vmul.f32 %v685_v23, %v685_v23 }
  0xaa   :  { %160 = vadd.xlane.f32.xlu2 %v131_v24  ;;  %164 = vadd.xlane.f32.xlu1 %v133_v25  ;;  %v736_v24 = vld [vmem:[%s913_s2] ss:$0 sm:$0xff]  ;;  %s546_s2 = smov [#allocation5]  }
  0xab   :  { %s434_s21 = sshll.u32 %s546_s2, 4  ;;  %s435_s21 = int_to_ptr.vmem [resolvable:$true] %s434_s21 }
  0xf4   :  { %v139_v26 = vpop.xlane.xlu0 %138 }
  0xf5   :  { %v135_v27 = vpop.xlane.xlu1 %134  ;;  %v168_v30 = vmul.f32 %v139_v26, %v600_v22 }
  0xf6   :  { %v166_v13 = vmul.f32 %v135_v27, %v600_v22 }
  0xf7   :  { %v184_v31 = vadd.f32 1e-05, %v168_v30 }
  0xf8   :  { %v182_v32 = vadd.f32 1e-05, %v166_v13 }
  0xf9   :  { %458 = vrsqrt.f32 %v184_v31  ;;  %vm224_vm3 = vweird.f32 %v184_v31 }
  0xfa   :  { %460 = vrsqrt.f32 %v182_v32  ;;  %vm204_vm4 = vweird.f32 %v182_v32 }
  0xfc   :  { %v145_v15 = vpop.xlane.xlu0 %144 }
  0xfd   :  { %v141_v33 = vpop.xlane.xlu1 %140  ;;  %v137_v34 = vpop.xlane.xlu2 %136  ;;  %v171_v35 = vmul.f32 %v145_v15, %v600_v22 }
  0xfe   :  { %v169_v36 = vmul.f32 %v141_v33, %v600_v22  ;;  %v167_v37 = vmul.f32 %v137_v34, %v600_v22 }
  0xff   :  { %v459_v41 = vpop.eup %458  ;;  %v696_v42 = vadd.f32 1e-05, %v171_v35 }
 0x100   :  { %v461_v43 = vpop.eup %460  ;;  %v219_v44 = vmul.f32 %v459_v41, %v184_v31  ;;  %v698_v45 = vadd.f32 1e-05, %v169_v36  ;;  %v700_v46 = vadd.f32 1e-05, %v167_v37  ;;  %vm225_vm1 = vweird.f32 %v459_v41 }
 0x101   :  { %v199_v47 = vmul.f32 %v461_v43, %v182_v32  ;;  %462 = vrsqrt.f32 %v696_v42  ;;  %vm205_vm2 = vweird.f32 %v461_v43  ;;  %vm226_vm5 = vmor %vm224_vm3, %vm225_vm1  ;;  %vm254_vm7 = vweird.f32 %v696_v42 }
 0x102   :  { %v220_v48 = vmul.f32 %v459_v41, %v219_v44  ;;  %464 = vrsqrt.f32 %v698_v45  ;;  %vm206_vm6 = vmor %vm204_vm4, %vm205_vm2  ;;  %vm234_vm11 = vweird.f32 %v698_v45  ;;  %vm214_vm12 = vweird.f32 %v700_v46 }
 0x103   :  { %v200_v50 = vmul.f32 %v461_v43, %v199_v47  ;;  %466 = vrsqrt.f32 %v700_v46 }
 0x104   :  { %v221_v53 = vmul.f32 0.5, %v220_v48  ;;  %v151_v54 = vpop.xlane.xlu0 %150 }
 0x105   :  { %v201_v55 = vmul.f32 0.5, %v200_v50  ;;  %v143_v56 = vpop.xlane.xlu2 %142  ;;  %v147_v57 = vpop.xlane.xlu1 %146  ;;  %v174_v62 = vmul.f32 %v151_v54, %v600_v22 }
 0x106   :  { %v222_v59 = vsub.f32 1.5, %v221_v53  ;;  %v170_v60 = vmul.f32 %v143_v56, %v600_v22  ;;  %v172_v61 = vmul.f32 %v147_v57, %v600_v22 }
 0x107   :  { %v708_v1 = vpop.eup %462  ;;  %v202_v2 = vsub.f32 1.5, %v201_v55  ;;  %v731_v14 = vadd.f32 1e-05, %v174_v62 }
 0x108   :  { %v710_v3 = vpop.eup %464  ;;  %v223_v4 = vmul.f32 %v459_v41, %v222_v59  ;;  %v249_v5 = vmul.f32 %v708_v1, %v696_v42  ;;  %v714_v7 = vadd.f32 1e-05, %v170_v60  ;;  %v726_v19 = vadd.f32 1e-05, %v172_v61 }
 0x109   :  { %v716_v8 = vpop.eup %466  ;;  %v203_v11 = vmul.f32 %v461_v43, %v202_v2  ;;  %v229_v18 = vmul.f32 %v710_v3, %v698_v45  ;;  %vm255_vm8 = vweird.f32 %v708_v1  ;;  %vm235_vm9 = vweird.f32 %v710_v3 }
 0x10a   :  { %v227_v10 = vsel %vm226_vm5, %v459_v41, %v223_v4  ;;  %v209_v20 = vmul.f32 %v716_v8, %v700_v46  ;;  %v250_v21 = vmul.f32 %v708_v1, %v249_v5  ;;  %468 = vrsqrt.f32 %v714_v7  ;;  %vm256_vm13 = vmor %vm254_vm7, %vm255_vm8 }
 0x10b   :  { %v207_v25 = vsel %vm206_vm6, %v461_v43, %v203_v11  ;;  %v360_v26 = vmul.f32 %v227_v10, %v604_v28  ;;  %v230_v27 = vmul.f32 %v710_v3, %v229_v18  ;;  %470 = vrsqrt.f32 %v726_v19  ;;  %vm236_vm14 = vmor %vm234_vm11, %vm235_vm9 }
 0x10c   :  { %v358_v30 = vmul.f32 %v207_v25, %v606_v29  ;;  %v210_v13 = vmul.f32 %v716_v8, %v209_v20  ;;  %v251_v31 = vmul.f32 0.5, %v250_v21  ;;  %472 = vrsqrt.f32 %v731_v14  ;;  %v157_v48 = vpop.xlane.xlu0 %156 }
 0x10d   :  { %v380_v32 = vmul.f32 %v721_v9, %v360_v26  ;;  %v231_v15 = vmul.f32 0.5, %v230_v27  ;;  %v149_v33 = vpop.xlane.xlu2 %148  ;;  %v153_v41 = vpop.xlane.xlu1 %152  ;;  %vm215_vm10 = vweird.f32 %v716_v8  ;;  %vm244_vm15 = vweird.f32 %v714_v7 }
 0x10e   :  { %v378_v28 = vmul.f32 %v721_v9, %v358_v30  ;;  %v211_v34 = vmul.f32 0.5, %v210_v13  ;;  %v252_v35 = vsub.f32 1.5, %v251_v31  ;;  %v173_v37 = vmul.f32 %v149_v33, %v600_v22  ;;  %vm216_vm0 = vmor %vm214_vm12, %vm215_vm10 }
 0x10f   :  { %v400_v29 = vadd.f32 %v736_v24, %v380_v32  ;;  %v232_v36 = vsub.f32 1.5, %v231_v15  ;;  %v175_v46 = vmul.f32 %v153_v41, %v600_v22  ;;  %v177_v60 = vmul.f32 %v157_v48, %v600_v22 }
 0x110   :  { %v398_v43 = vadd.f32 %v736_v24, %v378_v28  ;;  %v212_v44 = vsub.f32 1.5, %v211_v34  ;;  %v253_v47 = vmul.f32 %v708_v1, %v252_v35  ;;  %v755_v50 = vpop.eup %468  ;;  %v764_v54 = vadd.f32 1e-05, %v173_v37 }
 0x111   :  { %416 = vst [vmem:[#allocation5 + $0x10] sm:$0xff] %v400_v29  ;;  %v233_v53 = vmul.f32 %v710_v3, %v232_v36  ;;  %v239_v45 = vmul.f32 %v755_v50, %v714_v7  ;;  %v774_v57 = vpop.eup %470  ;;  %vm264_vm1 = vweird.f32 %v726_v19  ;;  %vm245_vm2 = vweird.f32 %v755_v50 }
 0x112   :  { %414 = vst [vmem:[#allocation5] sm:$0xff] %v398_v43  ;;  %v213_v55 = vmul.f32 %v716_v8, %v212_v44  ;;  %v257_v56 = vsel %vm256_vm13, %v708_v1, %v253_v47  ;;  %474 = vrsqrt.f32 %v764_v54  ;;  %v473_v61 = vpop.eup %472  ;;  %v259_v4 = vmul.f32 %v774_v57, %v726_v19  ;;  %vm246_vm5 = vmor %vm244_vm15, %vm245_vm2 }
 0x113   :  { %v237_v42 = vsel %vm236_vm14, %v710_v3, %v233_v53  ;;  %v363_v59 = vmul.f32 %v257_v56, %v615_v38  ;;  %v240_v2 = vmul.f32 %v755_v50, %v239_v45  ;;  %v279_v38 = vmul.f32 %v473_v61, %v731_v14 }
 0x114   :  { %v361_v62 = vmul.f32 %v237_v42, %v617_v39  ;;  %v217_v1 = vsel %vm216_vm0, %v716_v8, %v213_v55  ;;  %v260_v39 = vmul.f32 %v774_v57, %v259_v4  ;;  %v799_v30 = vadd.f32 1e-05, %v177_v60  ;;  %v163_v36 = vpop.xlane.xlu0 %162 }
 0x115   :  { %v359_v3 = vmul.f32 %v217_v1, %v619_v40  ;;  %v383_v5 = vmul.f32 %v721_v9, %v363_v59  ;;  %v155_v11 = vpop.xlane.xlu2 %154  ;;  %v241_v10 = vmul.f32 0.5, %v240_v2  ;;  %v280_v21 = vmul.f32 %v473_v61, %v279_v38  ;;  %v159_v15 = vpop.xlane.xlu1 %158 }
 0x116   :  { %v381_v18 = vmul.f32 %v721_v9, %v361_v62  ;;  %v796_v40 = vadd.f32 1e-05, %v175_v46  ;;  %v261_v27 = vmul.f32 0.5, %v260_v39  ;;  %vm284_vm3 = vweird.f32 %v731_v14 }
 0x117   :  { %v379_v8 = vmul.f32 %v721_v9, %v359_v3  ;;  %v403_v20 = vadd.f32 %v736_v24, %v383_v5  ;;  %v242_v26 = vsub.f32 1.5, %v241_v10  ;;  %v281_v32 = vmul.f32 0.5, %v280_v21 }
 0x118   :  { %v401_v25 = vadd.f32 %v736_v24, %v381_v18  ;;  %v801_v13 = vpop.eup %474  ;;  %476 = vrsqrt.f32 %v796_v40  ;;  %v262_v28 = vsub.f32 1.5, %v261_v27  ;;  %vm265_vm4 = vweird.f32 %v774_v57 }
 0x119   :  { %v399_v31 = vadd.f32 %v736_v24, %v379_v8  ;;  %419 = vst [vmem:[#allocation5 + $0x28] sm:$0xff] %v403_v20  ;;  %v243_v33 = vmul.f32 %v755_v50, %v242_v26  ;;  %v269_v34 = vmul.f32 %v801_v13, %v764_v54  ;;  %v282_v35 = vsub.f32 1.5, %v281_v32  ;;  %vm266_vm7 = vmor %vm264_vm1, %vm265_vm4 }
 0x11a   :  { %417 = vst [vmem:[#allocation5 + $0x18] sm:$0xff] %v401_v25  ;;  %vm285_vm6 = vweird.f32 %v473_v61  ;;  %478 = vrsqrt.f32 %v799_v30  ;;  %v176_v29 = vmul.f32 %v155_v11, %v600_v22  ;;  %v263_v41 = vmul.f32 %v774_v57, %v262_v28 }
 0x11b   :  { %415 = vst [vmem:[#allocation5 + $0x8] sm:$0xff] %v399_v31  ;;  %v247_v37 = vsel %vm246_vm5, %v755_v50, %v243_v33  ;;  %v270_v43 = vmul.f32 %v801_v13, %v269_v34  ;;  %v178_v44 = vmul.f32 %v159_v15, %v600_v22  ;;  %v283_v7 = vmul.f32 %v473_v61, %v282_v35  ;;  %vm286_vm9 = vmor %vm284_vm3, %vm285_vm6 }
 0x11c   :  { %v362_v47 = vmul.f32 %v247_v37, %v630_v49  ;;  %vm274_vm8 = vweird.f32 %v764_v54  ;;  %v824_v48 = vadd.f32 1e-05, %v176_v29  ;;  %v267_v53 = vsel %vm266_vm7, %v774_v57, %v263_v41 }
 0x11d   :  { %v271_v50 = vmul.f32 0.5, %v270_v43  ;;  %v829_v55 = vadd.f32 1e-05, %v178_v44  ;;  %v180_v56 = vmul.f32 %v163_v36, %v600_v22  ;;  %v161_v45 = vpop.xlane.xlu2 %160  ;;  %v364_v46 = vmul.f32 %v267_v53, %v635_v52  ;;  %v165_v39 = vpop.xlane.xlu1 %164 }
 0x11e   :  { %v477_v49 = vpop.eup %476  ;;  %v382_v19 = vmul.f32 %v721_v9, %v362_v47  ;;  %v287_v42 = vsel %vm286_vm9, %v473_v61, %v283_v7  ;;  %480 = vrsqrt.f32 %v824_v48  ;;  %vm275_vm10 = vweird.f32 %v801_v13 }
 0x11f   :  { %v366_v59 = vmul.f32 %v287_v42, %v633_v51  ;;  %v272_v57 = vsub.f32 1.5, %v271_v50  ;;  %v289_v14 = vmul.f32 %v477_v49, %v796_v40  ;;  %v384_v1 = vmul.f32 %v721_v9, %v364_v46  ;;  %vm276_vm11 = vmor %vm274_vm8, %vm275_vm10 }
 0x120   :  { %v479_v60 = vpop.eup %478  ;;  %v402_v62 = vadd.f32 %v736_v24, %v382_v19  ;;  %482 = vrsqrt.f32 %v829_v55  ;;  %v179_v2 = vmul.f32 %v161_v45, %v600_v22  ;;  %vm294_vm12 = vweird.f32 %v796_v40 }
 0x121   :  { %v386_v52 = vmul.f32 %v721_v9, %v366_v59  ;;  %v273_v61 = vmul.f32 %v801_v13, %v272_v57  ;;  %v290_v4 = vmul.f32 %v477_v49, %v289_v14  ;;  %v309_v51 = vmul.f32 %v479_v60, %v799_v30 }
 0x122   :  { %418 = vst [vmem:[#allocation5 + $0x20] sm:$0xff] %v402_v62  ;;  %v404_v3 = vadd.f32 %v736_v24, %v384_v1  ;;  %v849_v5 = vadd.f32 1e-05, %v180_v56  ;;  %vm314_vm13 = vweird.f32 %v799_v30  ;;  %v856_v54 = vadd.f32 1e-05, %v179_v2 }
 0x123   :  { %v406_v38 = vadd.f32 %v736_v24, %v386_v52  ;;  %v277_v11 = vsel %vm276_vm11, %v801_v13, %v273_v61  ;;  %v291_v18 = vmul.f32 0.5, %v290_v4  ;;  %v310_v10 = vmul.f32 %v479_v60, %v309_v51 }
 0x124   :  { %v481_v8 = vpop.eup %480  ;;  %420 = vst [vmem:[#allocation5 + $0x30] sm:$0xff] %v404_v3  ;;  %v365_v20 = vmul.f32 %v277_v11, %v645_v58  ;;  %484 = vrsqrt.f32 %v849_v5  ;;  %vm295_vm14 = vweird.f32 %v477_v49  ;;  %vm315_vm15 = vweird.f32 %v479_v60 }
 0x125   :  { %422 = vst [vmem:[#allocation5 + $0x40] sm:$0xff] %v406_v38  ;;  %v292_v21 = vsub.f32 1.5, %v291_v18  ;;  %v311_v25 = vmul.f32 0.5, %v310_v10  ;;  %v299_v26 = vmul.f32 %v481_v8, %v824_v48  ;;  %486 = vrsqrt.f32 %v856_v54  ;;  %vm296_vm0 = vmor %vm294_vm12, %vm295_vm14 }
 0x126   :  { %v483_v27 = vpop.eup %482  ;;  %v385_v13 = vmul.f32 %v721_v9, %v365_v20  ;;  %v181_v58 = vmul.f32 %v165_v39, %v600_v22  ;;  %vm316_vm1 = vmor %vm314_vm13, %vm315_vm15  ;;  %vm305_vm2 = vweird.f32 %v481_v8  ;;  %vm304_vm3 = vweird.f32 %v824_v48 }
 0x127   :  { %v293_v31 = vmul.f32 %v477_v49, %v292_v21  ;;  %v312_v32 = vsub.f32 1.5, %v311_v25  ;;  %v300_v15 = vmul.f32 %v481_v8, %v299_v26  ;;  %v319_v33 = vmul.f32 %v483_v27, %v829_v55  ;;  %vm306_vm5 = vmor %vm304_vm3, %vm305_vm2 }
 0x128   :  { %v405_v28 = vadd.f32 %v736_v24, %v385_v13  ;;  %v866_v34 = vadd.f32 1e-05, %v181_v58  ;;  %vm325_vm4 = vweird.f32 %v483_v27  ;;  %vm324_vm6 = vweird.f32 %v829_v55 }
 0x129   :  { %v297_v35 = vsel %vm296_vm0, %v477_v49, %v293_v31  ;;  %v313_v29 = vmul.f32 %v479_v60, %v312_v32  ;;  %v301_v36 = vmul.f32 0.5, %v300_v15  ;;  %v320_v37 = vmul.f32 %v483_v27, %v319_v33  ;;  %vm326_vm7 = vmor %vm324_vm6, %vm325_vm4 }
 0x12a   :  { %v485_v41 = vpop.eup %484  ;;  %421 = vst [vmem:[#allocation5 + $0x38] sm:$0xff] %v405_v28  ;;  %v367_v22 = vmul.f32 %v297_v35, %v653_v0  ;;  %488 = vrsqrt.f32 %v866_v34  ;;  %vm344_vm8 = vweird.f32 %v849_v5  ;;  %vm334_vm12 = vweird.f32 %v856_v54 }
 0x12b   :  { %v317_v43 = vsel %vm316_vm1, %v479_v60, %v313_v29  ;;  %v302_v40 = vsub.f32 1.5, %v301_v36  ;;  %v321_v44 = vmul.f32 0.5, %v320_v37  ;;  %v339_v47 = vmul.f32 %v485_v41, %v849_v5  ;;  %v487_v7 = vpop.eup %486 }
 0x12c   :  { %v387_v53 = vmul.f32 %v721_v9, %v367_v22  ;;  %v369_v50 = vmul.f32 %v317_v43, %v650_v63  ;;  %v329_v45 = vmul.f32 %v487_v7, %v856_v54  ;;  %vm345_vm9 = vweird.f32 %v485_v41 }
 0x12d   :  { %v303_v0 = vmul.f32 %v481_v8, %v302_v40  ;;  %v322_v56 = vsub.f32 1.5, %v321_v44  ;;  %v340_v30 = vmul.f32 %v485_v41, %v339_v47  ;;  %vm335_vm10 = vweird.f32 %v487_v7  ;;  %vm346_vm11 = vmor %vm344_vm8, %vm345_vm9 }
 0x12e   :  { %v407_v49 = vadd.f32 %v736_v24, %v387_v53  ;;  %v389_v19 = vmul.f32 %v721_v9, %v369_v50  ;;  %v330_v63 = vmul.f32 %v487_v7, %v329_v45  ;;  %vm336_vm13 = vmor %vm334_vm12, %vm335_vm10  ;;  %vm354_vm15 = vweird.f32 %v866_v34 }
 0x12f   :  { %v307_v46 = vsel %vm306_vm5, %v481_v8, %v303_v0  ;;  %v323_v42 = vmul.f32 %v483_v27, %v322_v56  ;;  %v341_v59 = vmul.f32 0.5, %v340_v30 }
 0x130   :  { %v489_v57 = vpop.eup %488  ;;  %423 = vst [vmem:[#allocation5 + $0x48] sm:$0xff] %v407_v49  ;;  %v409_v48 = vadd.f32 %v736_v24, %v389_v19  ;;  %v368_v14 = vmul.f32 %v307_v46, %v663_v6  ;;  %v331_v1 = vmul.f32 0.5, %v330_v63 }
 0x131   :  { %v327_v60 = vsel %vm326_vm7, %v483_v27, %v323_v42  ;;  %v342_v62 = vsub.f32 1.5, %v341_v59  ;;  %v349_v55 = vmul.f32 %v489_v57, %v866_v34  ;;  %vm355_vm14 = vweird.f32 %v489_v57 }
 0x132   :  { %425 = vst [vmem:[#allocation5 + $0x58] sm:$0xff] %v409_v48  ;;  %v388_v2 = vmul.f32 %v721_v9, %v368_v14  ;;  %v370_v52 = vmul.f32 %v327_v60, %v671_v17  ;;  %v332_v4 = vsub.f32 1.5, %v331_v1  ;;  %vm356_vm0 = vmor %vm354_vm15, %vm355_vm14 }
 0x133   :  { %v343_v61 = vmul.f32 %v485_v41, %v342_v62  ;;  %v350_v51 = vmul.f32 %v489_v57, %v349_v55 }
 0x134   :  { %v408_v6 = vadd.f32 %v736_v24, %v388_v2  ;;  %v390_v3 = vmul.f32 %v721_v9, %v370_v52  ;;  %v333_v11 = vmul.f32 %v487_v7, %v332_v4 }
 0x135   :  { %v347_v38 = vsel %vm346_vm11, %v485_v41, %v343_v61  ;;  %v351_v18 = vmul.f32 0.5, %v350_v51 }
 0x136   :  { %424 = vst [vmem:[#allocation5 + $0x50] sm:$0xff] %v408_v6  ;;  %v410_v10 = vadd.f32 %v736_v24, %v390_v3  ;;  %v372_v17 = vmul.f32 %v347_v38, %v668_v16  ;;  %v337_v39 = vsel %vm336_vm13, %v487_v7, %v333_v11 }
 0x137   :  { %v352_v8 = vsub.f32 1.5, %v351_v18  ;;  %v371_v5 = vmul.f32 %v337_v39, %v681_v12 }
 0x138   :  { %426 = vst [vmem:[#allocation5 + $0x60] sm:$0xff] %v410_v10  ;;  %v392_v20 = vmul.f32 %v721_v9, %v372_v17 }
 0x139   :  { %v353_v21 = vmul.f32 %v489_v57, %v352_v8  ;;  %v391_v25 = vmul.f32 %v721_v9, %v371_v5 }
 0x13a   :  { %v412_v54 = vadd.f32 %v736_v24, %v392_v20 }
 0x13b   :  { %v357_v26 = vsel %vm356_vm0, %v489_v57, %v353_v21  ;;  %v411_v16 = vadd.f32 %v736_v24, %v391_v25 }
 0x13c   :  { %428 = vst [vmem:[#allocation5 + $0x70] sm:$0xff] %v412_v54  ;;  %v373_v27 = vmul.f32 %v357_v26, %v685_v23 }
 0x13d   :  { %427 = vst [vmem:[#allocation5 + $0x68] sm:$0xff] %v411_v16 }
 0x13e   :  { %v393_v12 = vmul.f32 %v721_v9, %v373_v27 }
 0x140   :  { %v413_v13 = vadd.f32 %v736_v24, %v393_v12 }
 0x142   :  { %429 = vst [vmem:[#allocation5 + $0x78] sm:$0xff] %v413_v13 }
 0x143   :  { %442 = dma.vmem_to_hbm [thread:$0]  %s435_s21, 2048, %s437_s24, [#allocation4], %s543_s17, %s543_s17, %s544_s18  }
 0x144   :  { %540 = dma.done.wait [#allocation4], 2048  }
 0x145   :  { %541 = vsyncadd [#allocation4], 4294965248 }
 0x146   :  { %447 = vsyncpa [#allocation3], 1 }
 0x147   :  { %448 = vsyncpa [#allocation4], 1 }

</bundles_post_ra>
